<compile_context>
chip_gen: v7x
topology: tpu7x:2x2x1
jax: 0.10.0
libtpu: 0.0.40
codegen_flags: <defaults>
</compile_context>

<pallas_src>
import jax
import jax.numpy as jnp
from jax.experimental import pallas as pl
from jax.experimental.pallas import tpu as pltpu


def _round_up(x, m):
    return ((x + m - 1) // m) * m


# ----------------------------------------------------------------------------
# Kernel: fused 1x1-conv matmul (BN scale pre-folded into weights) + bias + ReLU
# ----------------------------------------------------------------------------
def _lin_kernel(w_ref, x_ref, bias_ref, o_ref):
    # w_ref:    (Cout, Cin)     BN-scaled conv weights (bf16)
    # x_ref:    (1, Cin, ts)    one batch element, one spatial tile (bf16)
    # bias_ref: (Cout, 1)       folded BN/conv bias (f32)
    # o_ref:    (1, Cout, ts)   output tile (f32), lane-dense along spatial
    acc = jnp.dot(w_ref[...], x_ref[0],
                  preferred_element_type=jnp.float32)       # (Cout, ts) f32
    o_ref[0] = jnp.maximum(acc + bias_ref[...], 0.0).astype(o_ref.dtype)


def lin_forward(x_nchw, conv_w, conv_b, gamma, beta, run_mean, run_var,
                eps=1e-5, max_spatial_tile=1024):
    """ReLU(BN(Conv2d_1x1(x))), BN in eval mode (running stats). NCHW in/out."""
    N, Cin, H, W = x_nchw.shape
    Cout = conv_w.shape[0]
    HW = H * W

    # --- fold BN into the conv --------------------------------------------
    # conv:  y = W x + b     bn: z = scale*(y - mean) + beta  with
    # scale = gamma / sqrt(var + eps).  scale*(W x) == (scale*W) x exactly.
    scale = gamma / jnp.sqrt(run_var + eps)                       # (Cout,)
    bias = (beta - scale * run_mean + scale * conv_b)             # (Cout,)

    w_mat = conv_w.reshape(Cout, Cin) * scale[:, None]            # (Cout, Cin)
    w_bf16 = w_mat.astype(jnp.bfloat16)
    bias2d = bias.reshape(Cout, 1).astype(jnp.float32)

    # --- spatial tiling (lane-dense output, no transposes) -----------------
    ts = min(_round_up(HW, 128), max_spatial_tile)                # tile (lanes)
    hw_pad = _round_up(HW, ts)

    x3 = x_nchw.reshape(N, Cin, HW)
    if hw_pad != HW:
        x3 = jnp.pad(x3, ((0, 0), (0, 0), (0, hw_pad - HW)))
    x3 = x3.astype(jnp.bfloat16)

    grid = (N, hw_pad // ts)

    out = pl.pallas_call(
        _lin_kernel,
        out_shape=jax.ShapeDtypeStruct((N, Cout, hw_pad), jnp.float32),
        grid_spec=pltpu.PrefetchScalarGridSpec(
            num_scalar_prefetch=0,
            grid=grid,
            in_specs=[
                pl.BlockSpec((Cout, Cin), lambda n, s: (0, 0)),    # weights
                pl.BlockSpec((1, Cin, ts), lambda n, s: (n, 0, s)),  # x tile
                pl.BlockSpec((Cout, 1), lambda n, s: (0, 0)),      # bias
            ],
            out_specs=pl.BlockSpec((1, Cout, ts), lambda n, s: (n, 0, s)),
        ),
        compiler_params=pltpu.CompilerParams(
            dimension_semantics=("parallel", "parallel")),
    )(w_bf16, x3, bias2d)

    if hw_pad != HW:
        out = out[:, :, :HW]
    return out.reshape(N, Cout, H, W)


# ----------------------------------------------------------------------------
# Pure-JAX (f32) reference for sanity checking
# ----------------------------------------------------------------------------
def lin_reference(x_nchw, conv_w, conv_b, gamma, beta, run_mean, run_var,
                  eps=1e-5):
    N, Cin, H, W = x_nchw.shape
    Cout = conv_w.shape[0]
    w_mat = conv_w.reshape(Cout, Cin)
    x_mat = jnp.transpose(x_nchw, (0, 2, 3, 1)).reshape(-1, Cin)
    y = x_mat @ w_mat.T + conv_b
    z = gamma * (y - run_mean) / jnp.sqrt(run_var + eps) + beta
    z = jnp.maximum(z, 0.0)
    return jnp.transpose(z.reshape(N, H, W, Cout), (0, 3, 1, 2))


if __name__ == "__main__":
    numIn, numOut = 128, 11
    N, H, W = 2, 16, 16

    key = jax.random.PRNGKey(0)
    k_x, k_w, k_b, k_g, k_bt, k_m, k_v = jax.random.split(key, 7)

    # Deterministic synthetic parameters (shapes from Lin.__init__).
    x = jax.random.normal(k_x, (N, numIn, H, W), dtype=jnp.float32)
    conv_w = jax.random.normal(k_w, (numOut, numIn, 1, 1), jnp.float32) * 0.05
    conv_b = jax.random.normal(k_b, (numOut,), jnp.float32) * 0.1
    gamma = 1.0 + 0.1 * jax.random.normal(k_g, (numOut,), jnp.float32)
    beta = 0.1 * jax.random.normal(k_bt, (numOut,), jnp.float32)
    run_mean = 0.1 * jax.random.normal(k_m, (numOut,), jnp.float32)
    run_var = jnp.abs(jax.random.normal(k_v, (numOut,), jnp.float32)) + 0.5

    out = lin_forward(x, conv_w, conv_b, gamma, beta, run_mean, run_var)
    out = jax.block_until_ready(out)

    ref = lin_reference(x, conv_w, conv_b, gamma, beta, run_mean, run_var)
    assert out.shape == (N, numOut, H, W)
    # bf16 inputs with f32 accumulation -> relaxed tolerance vs the f32 ref.
    max_diff = jnp.max(jnp.abs(out - ref))
    assert jnp.allclose(out, ref, atol=3e-2, rtol=3e-2), \
        f"max diff {max_diff}"

    print("KERNEL_OK")
</pallas_src>

<mosaic_0001>
module attributes {stable_mosaic.version = 11 : i64} {
  func.func @_lin_kernel(%arg0: i32, %arg1: i32, %arg2: memref<11x128xbf16, #tpu.memory_space<vmem>>, %arg3: memref<1x128x256xbf16, #tpu.memory_space<vmem>>, %arg4: memref<11x1xf32, #tpu.memory_space<vmem>>, %arg5: memref<1x11x256xf32, #tpu.memory_space<vmem>>) attributes {dimension_semantics = [#tpu.dimension_semantics<parallel>, #tpu.dimension_semantics<parallel>], iteration_bounds = array<i64: 2, 1>, scalar_prefetch = 0 : i64, scratch_operands = 0 : i64, tpu.core_type = #tpu.core_type<tc>, window_params = [{pipeline_mode = #tpu.pipeline_mode<synchronous>, transform_indices = @transform_0, window_bounds = array<i64: 11, 128>}, {transform_indices = @transform_1, window_bounds = array<i64: 1, 128, 256>}, {pipeline_mode = #tpu.pipeline_mode<synchronous>, transform_indices = @transform_2, window_bounds = array<i64: 11, 1>}, {transform_indices = @transform_3, window_bounds = array<i64: 1, 11, 256>}]} {
    %c0 = arith.constant 0 : index
    %c0_0 = arith.constant 0 : index
    %0 = vector.load %arg2[%c0, %c0_0] : memref<11x128xbf16, #tpu.memory_space<vmem>>, vector<11x128xbf16>
    %c0_1 = arith.constant 0 : index
    %c0_2 = arith.constant 0 : index
    %c0_3 = arith.constant 0 : index
    %1 = vector.load %arg3[%c0_1, %c0_2, %c0_3] : memref<1x128x256xbf16, #tpu.memory_space<vmem>>, vector<1x128x256xbf16>
    %2 = vector.shape_cast %1 : vector<1x128x256xbf16> to vector<128x256xbf16>
    %cst = arith.constant dense<0.000000e+00> : vector<11x256xf32>
    %3 = tpu.matmul %0, %2, %cst {dimension_numbers = #tpu.dot_dimension_numbers<[1], [0], [0], [1], [0, 0, 1, 1], [], []>} : vector<11x128xbf16>, vector<128x256xbf16>, vector<11x256xf32> -> vector<11x256xf32>
    %c0_4 = arith.constant 0 : index
    %c0_5 = arith.constant 0 : index
    %4 = vector.load %arg4[%c0_4, %c0_5] : memref<11x1xf32, #tpu.memory_space<vmem>>, vector<11x1xf32>
    %5 = vector.broadcast %4 : vector<11x1xf32> to vector<11x256xf32>
    %6 = arith.addf %3, %5 : vector<11x256xf32>
    %cst_6 = arith.constant 0.000000e+00 : f32
    %7 = vector.broadcast %cst_6 : f32 to vector<11x256xf32>
    %8 = arith.maximumf %6, %7 : vector<11x256xf32>
    %c0_7 = arith.constant 0 : index
    %c0_8 = arith.constant 0 : index
    %c0_9 = arith.constant 0 : index
    %9 = vector.load %arg5[%c0_7, %c0_8, %c0_9] : memref<1x11x256xf32, #tpu.memory_space<vmem>>, vector<1x11x256xf32>
    %10 = vector.shape_cast %9 : vector<1x11x256xf32> to vector<11x256xf32>
    %11 = vector.shape_cast %8 : vector<11x256xf32> to vector<1x11x256xf32>
    tpu.vector_store %arg5[%c0_7, %c0_8, %c0_9], %11 {strides = array<i32>} : memref<1x11x256xf32, #tpu.memory_space<vmem>>, vector<1x11x256xf32>,
    return
  }
  func.func @transform_0(%arg0: i32, %arg1: i32) -> (i32, i32) {
    %c0_i32 = arith.constant 0 : i32
    %c0_i32_0 = arith.constant 0 : i32
    %c0_i32_1 = arith.constant 0 : i32
    return %c0_i32, %c0_i32_0 : i32, i32
  }
  func.func @transform_1(%arg0: i32, %arg1: i32) -> (i32, i32, i32) {
    %c0_i32 = arith.constant 0 : i32
    %c0_i32_0 = arith.constant 0 : i32
    return %arg0, %c0_i32, %arg1 : i32, i32, i32
  }
  func.func @transform_2(%arg0: i32, %arg1: i32) -> (i32, i32) {
    %c0_i32 = arith.constant 0 : i32
    %c0_i32_0 = arith.constant 0 : i32
    %c0_i32_1 = arith.constant 0 : i32
    return %c0_i32, %c0_i32_0 : i32, i32
  }
  func.func @transform_3(%arg0: i32, %arg1: i32) -> (i32, i32, i32) {
    %c0_i32 = arith.constant 0 : i32
    %c0_i32_0 = arith.constant 0 : i32
    return %arg0, %c0_i32, %arg1 : i32, i32, i32
  }
}

</mosaic_0001>

<bundles_post_ra>
// kernel: tpu_custom_call.1
= control target key start
LH: loop header
LB: loop body
LE: loop exit
PB: predicated region body
PF: predicated region fallthrough
CT: control target
= control target key end

     0   :  { %8 = vsyncpa [#allocation3], 0  ;;  %s855_s0 = inlined_call_operand.vmem [shape: bf16[11,128], index: 0, kind: input, shape index: {}]   ;;  %s856_s1 = inlined_call_operand.hbm [shape: bf16[2,128,256], index: 1, kind: input, shape index: {}]   ;;  %s857_s2 = inlined_call_operand.vmem [shape: f32[11,1], index: 2, kind: input, shape index: {}]   ;;  %s858_s3 = inlined_call_operand.vmem [shape: f32[2,11,256], index: 3, kind: output, shape index: {}]  }
   0x1   :  { %10 = vsyncpa [#allocation3 + $0x1], 0  ;;  %s704_s12 = smov 0   ;;  %s706_s13 = smov 0  }
   0x2   :  { %s708_s14 = smov 0   ;;  %s710_s15 = smov 0  }
   0x3   :  { %s712_s16 = smov 0   ;;  %s714_s17 = smov 0  }
   0x4 LB: > { %s482_s18 = sadd.s32 4294967295, %s678_s17   ;;  %s28_s19 = sadd.s32 1, %s674_s16  ;;  %s678_s17 = sphi %s714_s17, %s16_s17   ;;  %s674_s16 = sphi %s712_s16, %s866_s16   ;;  %s670_s15 = sphi %s710_s15, %s865_s15   ;;  %s666_s14 = sphi %s708_s14, %s864_s14   ;;  %s662_s13 = sphi %s706_s13, %s863_s13   ;;  %s658_s12 = sphi %s704_s12, %s862_s12  }
   0x5   : > { %p30_p0 = scmp.ge.s32.totalorder %s28_s19, 2  ;;  %s58_s20 = sadd.s32 1, %s666_s14 }
   0x6   : > { %p65_p1 = scmp.ne.s32.totalorder %s666_s14, %s662_s13  ;;  %p66_p2 = scmp.eq.s32.totalorder %s678_s17, 0 }
   0x7   : > { %s868_s19 = smov (%p30_p0, %s28_s19), 0  ;;  %p71_p4 = scmp.ne.s32.totalorder %s662_s13, %s658_s12 }
   0x8   : > { %p740_p3 = por %p66_p2, %p65_p1  ;;  %s53_s22 = ssub.s32 %s674_s16, %s868_s19 }
   0x9   : > { %p72_p5 = scmp.eq.s32.totalorder %s482_s18, 0  ;;  %p56_p6 = scmp.eq.s32.totalorder %s53_s22, 0 }
   0xa   : > { %p520_p8 = scmp.lt.s32.totalorder %s678_s17, 2  ;;  %s150_s25 = sand.u32 1, %s666_s14  }
   0xb   : > { %p747_p7 = por %p72_p5, %p71_p4  ;;  %s512_s26 = sshll.u32 %s674_s16, 11 }
   0xc   : > { %s753_s24 = scalar_select %p56_p6, %s666_s14, %s58_s20  }
   0xd   : > { %s486_s27 = sshll.u32 %s150_s25, 7  ;;  %s760_s30 = scalar_lea.hbm %s856_s1, %s512_s26 }
   0xe   : > { %s154_s4 = scalar_lea.vmem [#allocation2], %s486_s27  ;;  %p764_p9 = pnand %p520_p8, %p740_p3 }
   0xf   : > { %s163_s5 = sshll.u32 %s154_s4, 4  ;;  %s770_s7 = scalar_lea.sflag [#allocation3], %s150_s25  ;;  %s768_s5 = int_to_ptr.vmem [resolvable:$true] %s163_s5 }
  0x10   : > { %s598_s8 = scalar_lea.hbm %s760_s30, 2048  ;;  %p600_p11 = pneg %p764_p9 }
  0x11   : > { %p599_p10 = scmp.ne.s32.totalorder %s760_s30, %s598_s8  ;;  %s603_s11 = scalar_lea.hbm %s856_s1, 4096 }
  0x12   : > { %p604_p0 = scmp.lt.u32.totalorder %s760_s30, %s856_s1  ;;  %p605_p1 = scmp.lt.u32.totalorder %s603_s11, %s598_s8 }
  0x13   : > { %p601_p12 = pnand %p600_p11, %p599_p10  ;;  %p607_p3 = scmp.lt.u32.totalorder %s598_s8, %s760_s30 }
  0x14   : > { %p606_p2 = por %p605_p1, %p604_p0 }
  0x15   : > { %p602_p13 = pneg %p601_p12 }
  0x16   : > { %p608_p4 = por %p607_p3, %p606_p2 }
  0x18   : > { %p609_p5 = pnand %p608_p4, %p602_p13 }
  0x1a   : > { %612 = shalt.err (!%p609_p5)
}
  0x1b   : > { %s613_s20 = scalar_lea.vmem %s768_s5, 2048  ;;  %s680_s21 = smov [#allocation2]  }
  0x1c   : > { %p614_p6 = scmp.ne.s32.totalorder %s768_s5, %s613_s20  ;;  %s618_s22 = sshll.u32 %s680_s21, 4  ;;  %s619_s22 = int_to_ptr.vmem [resolvable:$false] %s618_s22 }
  0x1d   : > { %s620_s25 = scalar_lea.vmem %s619_s22, 4096  ;;  %p621_p12 = scmp.lt.s32.totalorder %s768_s5, %s619_s22 }
  0x1e   : > { %p616_p8 = pnand %p614_p6, %p600_p11  ;;  %p622_p0 = scmp.lt.s32.totalorder %s620_s25, %s613_s20 }
  0x20   : > { %p617_p10 = pneg %p616_p8  ;;  %p623_p1 = por %p622_p0, %p621_p12 }
  0x22   : > { %p624_p2 = pnand %p623_p1, %p617_p10 }
  0x24   : > { %627 = shalt.err (!%p624_p2)
}
  0x25   : > { %s681_s26 = smov 128   ;;  %s682_s27 = smov 8  }
  0x26   : > { %519 = dma.hbm_to_vmem [thread:$0]  (!%p764_p9), %s760_s30, 2048, %s768_s5, %s770_s7, %s681_s26, %s681_s26, %s682_s27  }
  0x27   : > { %p489_p11 = scmp.ge.s32.totalorder %s678_s17, 1  ;;  %p171_p13 = scmp.lt.s32.totalorder %s678_s17, 3 }
  0x29   : > { %p172_p3 = pnand %p489_p11, %p171_p13 }
  0x2a   : > { %s177_s28 = sand.u32 (!%p172_p3), 1, %s662_s13  }
  0x2b   : > { %175 = sbr.rel (%p172_p3) target bundleno = 305 (0x131), region = 32  ;;  %s490_s29 = sshll.u32 (!%p172_p3), %s177_s28, 7 }
  0x2c   : > { %s178_s4 = scalar_lea.sflag (!%p172_p3), [#allocation3], %s177_s28  ;;  %s801_s8 = scalar_lea.vmem (!%p172_p3), [#allocation2], %s490_s29 }
  0x32   : > { %653 = dma.done.wait (%p747_p7), %s178_s4, 2048  }
  0x33   : > { %655 = vsyncadd (%p747_p7), %s178_s4, 4294965248  ;;  %v683_v0 = vmov 0   ;;  %v573_v1 = vld [vmem:[%s801_s8 + $0x4] ss:$8 sps:$4 sm:$0xff]   ;;  %v575_v2 = vld [vmem:[%s801_s8] ss:$8 sps:$4 sm:$0xff]  }
  0x34   : > { %368 = vmatprep.mubr.bf16.mxu0 %v683_v0  ;;  %572 = vset.pattern.permute.xlu0 %v683_v0  ;;  %v576_v3 = vld [vmem:[%s801_s8 + $0x14] ss:$8 sps:$4 sm:$0xff]   ;;  %v578_v4 = vld [vmem:[%s801_s8 + $0x10] ss:$8 sps:$4 sm:$0xff]   ;;  %v579_v5 = vld [vmem:[%s801_s8 + $0x24] ss:$8 sps:$4 sm:$0xff]  }
  0x35   : > { %336 = vmatprep.subr.bf16.mxu0 %v573_v1  ;;  %v581_v6 = vld [vmem:[%s801_s8 + $0x20] ss:$8 sps:$4 sm:$0xff]   ;;  %v582_v7 = vld [vmem:[%s801_s8 + $0x34] ss:$8 sps:$4 sm:$0xff]   ;;  %v584_v8 = vld [vmem:[%s801_s8 + $0x30] ss:$8 sps:$4 sm:$0xff]  }
  0x36   : > { %337 = vmatpush1.bf16.msra.mxu0 %v575_v2  ;;  %v238_v9 = vld [vmem:[%s857_s2] sm:$0xff]  ;;  %v239_v11 = vld [vmem:[%s857_s2 + $0x8] sm:$0x7]  ;;  %v588_v13 = vld [vmem:[%s801_s8 + $0x54] ss:$8 sps:$4 sm:$0xff]   ;;  %p210_p7 = scmp.lt.s32.totalorder %s670_s15, 1 }
  0x37   : > { %338 = vmatprep.subr.bf16.mxu0 %v576_v3  ;;  %v585_v10 = vld [vmem:[%s801_s8 + $0x44] ss:$8 sps:$4 sm:$0xff]   ;;  %242 = vperm.xlu0 %572, %v238_v9   ;;  %v587_v12 = vld [vmem:[%s801_s8 + $0x40] ss:$8 sps:$4 sm:$0xff]   ;;  %v590_v14 = vld [vmem:[%s801_s8 + $0x50] ss:$8 sps:$4 sm:$0xff]  }
  0x38   : > { %v591_v15 = vld [vmem:[%s801_s8 + $0x64] ss:$8 sps:$4 sm:$0xff]   ;;  %v593_v16 = vld [vmem:[%s801_s8 + $0x60] ss:$8 sps:$4 sm:$0xff]   ;;  %v594_v17 = vld [vmem:[%s801_s8 + $0x74] ss:$8 sps:$4 sm:$0xff]  }
  0x39   : > { %v596_v18 = vld [vmem:[%s801_s8 + $0x70] ss:$8 sps:$4 sm:$0xff]   ;;  %v597_v19 = vld [vmem:[%s855_s0] sm:$0x3f]   ;;  %s870_s15 = smov (!%p210_p7, %s670_s15), 1 }
  0x3a   : > { %339 = vmatpush1.bf16.msra.mxu0 %v578_v4  ;;  %s513_s10 = sshll.u32 %s870_s15, 5 }
  0x3b   : > { %340 = vmatprep.subr.bf16.mxu0 %v579_v5  ;;  %247 = vperm.xlu0 %572, %v239_v11   ;;  %s217_s18 = scalar_lea.vmem %s858_s3, %s513_s10 }
  0x3e   : > { %341 = vmatpush1.bf16.msra.mxu0 %v581_v6 }
  0x3f   : > { %342 = vmatprep.subr.bf16.mxu0 %v582_v7 }
  0x42   : > { %343 = vmatpush1.bf16.msra.mxu0 %v584_v8 }
  0x43   : > { %344 = vmatprep.subr.bf16.mxu0 %v585_v10 }
  0x46   : > { %345 = vmatpush1.bf16.msra.mxu0 %v587_v12 }
  0x47   : > { %346 = vmatprep.subr.bf16.mxu0 %v588_v13 }
  0x4a   : > { %347 = vmatpush1.bf16.msra.mxu0 %v590_v14 }
  0x4b   : > { %348 = vmatprep.subr.bf16.mxu0 %v591_v15 }
  0x4e   : > { %349 = vmatpush1.bf16.msra.mxu0 %v593_v16 }
  0x4f   : > { %350 = vmatprep.subr.bf16.mxu0 %v594_v17 }
  0x52   : > { %351 = vmatpush1.bf16.msra.mxu0 %v596_v18 }
  0x55   : > { %369 = vmatmul.mubr.bf16.vlgmr.msra.gmra.mrb[0].mxu0 %v597_v19 }
  0xb6   : > { %v243_v20 = vpop.permute.xlu0 %242 }
  0xba   : > { %v248_v24 = vpop.permute.xlu0 %247 }
 0x128   : > { %v370_v21 = vpop.f32.mrb[0].mxu0 }
 0x129   : > { %v371_v22 = vadd.f32 %v370_v21, %v243_v20  ;;  %v372_v23 = vpop.f32.mrb[1].mxu0 }
 0x12a   : > { %v373_v25 = vadd.f32 %v372_v23, %v243_v20  ;;  %v374_v26 = vpop.f32.mrb[2].mxu0 }
 0x12b   : > { %v379_v27 = vmax.f32 %v371_v22, 0.0  ;;  %v375_v28 = vadd.f32 %v374_v26, %v248_v24  ;;  %v376_v29 = vpop.f32.mrb[3].mxu0 }
 0x12c   : > { %v380_v30 = vmax.f32 %v373_v25, 0.0  ;;  %v377_v31 = vadd.f32 %v376_v29, %v248_v24 }
 0x12d   : > { %383 = vst [vmem:[%s217_s18] sm:$0xff] %v379_v27  ;;  %v381_v32 = vmax.f32 %v375_v28, 0.0 }
 0x12e   : > { %384 = vst [vmem:[%s217_s18 + $0x8] sm:$0xff] %v380_v30  ;;  %v382_v33 = vmax.f32 %v377_v31, 0.0 }
 0x12f   : > { %385 = vst [vmem:[%s217_s18 + $0x10] sm:$0x7] %v381_v32 }
 0x130   : > { %386 = vst [vmem:[%s217_s18 + $0x18] sm:$0x7] %v382_v33 }
 0x131 PF: > { %s16_s17 = sadd.s32 1, %s678_s17   ;;  %s862_s12 = smov %s662_s13 }
 0x132   : > { %p13_p9 = scmp.ge.s32.totalorder %s16_s17, 4   ;;  %s863_s13 = smov %s666_s14 }
 0x133   : > { %s864_s14 = smov %s753_s24  ;;  %s865_s15 = smov %s674_s16 }
 0x134   : > { %s866_s16 = smov %s868_s19  ;;  %15 = sbr.rel (!%p13_p9) target bundleno = 4 (0x4), region = 72 }
 0x13b   :  { %417 = vsyncpa [#allocation3], 1 }
 0x13c   :  { %419 = vsyncpa [#allocation3 + $0x1], 1 }

</bundles_post_ra>
